<compile_context>
chip_gen: v7x
topology: tpu7x:2x2x1
jax: 0.10.0
libtpu: 0.0.40
codegen_flags: <defaults>
</compile_context>

<pallas_src>
import functools
import math

import jax
import jax.numpy as jnp
from jax.experimental import pallas as pl
from jax.experimental.pallas import tpu as pltpu


def _round_up(x, m):
    return -(-x // m) * m


def _vmem_capacity_bytes():
    """Physical VMEM of the current TPU generation (128 MiB v5e/v6e, 64 MiB
    v7x).  Falls back to the conservative 64 MiB if the query is unavailable."""
    try:
        cap = getattr(pltpu.get_tpu_info(), "vmem_capacity_bytes", None)
        if cap:
            return int(cap)
    except Exception:
        pass
    return 64 * 1024 * 1024


def _choose_tq(N, d, d_model_pad, budget_bytes, kv_itemsize, p_itemsize):
    """Largest row tile TQ whose per-step VMEM footprint fits budget_bytes.
    Prefers TQ = N; otherwise only MXU-friendly multiples of 128 (>= 128),
    padding the row count when TQ does not divide N.  Returns (tq, n_rows)."""
    f32 = 4

    def footprint(tq):
        out = 2 * tq * (d_model_pad * f32 + N * p_itemsize)   # dbl-buffered Z, P
        kv = 2 * N * d_model_pad * kv_itemsize                 # resident K/V scratch
        x_bufs = 2 * (N * d * kv_itemsize + tq * d * f32)      # x_full / x_tile buffers
        w = 2 * d * (3 * d_model_pad + 1) * f32                # weight buffers
        inter = 4 * tq * N * f32                               # qk / exp / delta / gauss
        return out + kv + x_bufs + w + inter

    if footprint(N) <= budget_bytes:
        return N, N
    for cand in (2048, 1024, 512, 256, 128):    # >= 128, MXU-width multiples only
        if cand < N and footprint(cand) <= budget_bytes:
            return cand, _round_up(N, cand)
    return 128, _round_up(N, 128)               # last resort; compiler may spill


def _attention_core(x_tile_f32, wq_ref, ws_ref, k, v, row0, z_ref, p_ref,
                    exp_dtype):
    """Shared per-row-tile math.  x_tile_f32: (TQ, d) f32; k, v: (N, dm) in the
    compute dtype; wq_ref already carries the folded 1/sqrt(d_model) scale."""
    tq = z_ref.shape[1]
    n = k.shape[0]
    cdt = k.dtype

    q = jnp.dot(x_tile_f32.astype(cdt), wq_ref[...],
                preferred_element_type=jnp.float32).astype(cdt)          # (TQ, dm)
    # sigma feeds an exponent -> keep it f32 end to end.
    sigma = jnp.dot(x_tile_f32, ws_ref[...],
                    preferred_element_type=jnp.float32)                  # (TQ, 1)

    # ---- series association: softmax(Q K^T); scale already folded into Wq ----
    # dot_general contracts the last dims directly; no k.T materialization.
    qk = jax.lax.dot_general(q, k, dimension_numbers=(((1,), (1,)), ((), ())),
                             preferred_element_type=jnp.float32)         # (TQ, N)
    e = jnp.exp((qk - jnp.max(qk, axis=-1, keepdims=True)).astype(exp_dtype)
                ).astype(jnp.float32)
    s = e * pl.reciprocal(jnp.sum(e, axis=-1, keepdims=True), approx=True)

    # ---- reconstruction: Z = S @ V ----
    z_ref[0] = jnp.dot(s.astype(cdt), v,
                       preferred_element_type=jnp.float32).astype(z_ref.dtype)

    # ---- prior association: row-normalized gaussian of (i - j) ----
    # abs() is unnecessary (delta is squared); the 1/(sqrt(2*pi)|sigma|) factor
    # cancels under the row normalization (mathematically exact).
    row = (jax.lax.broadcasted_iota(jnp.int32, (tq, 1), 0) + row0
           ).astype(jnp.float32)
    col = jax.lax.broadcasted_iota(jnp.int32, (1, n), 1).astype(jnp.float32)
    delta = row - col                                                    # (TQ, N)
    # NOTE: sigma == 0 yields inf/NaN here, exactly like the PyTorch module.
    c = -0.5 / (sigma * sigma)                                           # (TQ, 1)
    gauss = jnp.exp(((delta * delta) * c).astype(exp_dtype)).astype(jnp.float32)
    p_ref[0] = (gauss * pl.reciprocal(jnp.sum(gauss, axis=-1, keepdims=True),
                                      approx=True)).astype(p_ref.dtype)


def _fused_kernel(exp_dtype, x_full_ref, x_tile_ref, wq_ref, wk_ref, wv_ref,
                  ws_ref, z_ref, p_ref, kv_ref):
    j = pl.program_id(1)

    # K / V projections for the whole window: once per batch element; the kv
    # scratch stays resident across this batch element's row tiles.
    @pl.when(j == 0)
    def _():
        x_full = x_full_ref[0]                                           # (N, d)
        kv_ref[0] = jnp.dot(x_full, wk_ref[...],
                            preferred_element_type=jnp.float32
                            ).astype(kv_ref.dtype)
        kv_ref[1] = jnp.dot(x_full, wv_ref[...],
                            preferred_element_type=jnp.float32
                            ).astype(kv_ref.dtype)

    _attention_core(x_tile_ref[0], wq_ref, ws_ref, kv_ref[0], kv_ref[1],
                    j * z_ref.shape[1], z_ref, p_ref, exp_dtype)


def _hoisted_kernel(exp_dtype, x_tile_ref, k_ref, v_ref, wq_ref, ws_ref,
                    z_ref, p_ref):
    j = pl.program_id(1)
    _attention_core(x_tile_ref[0], wq_ref, ws_ref, k_ref[0], v_ref[0],
                    j * z_ref.shape[1], z_ref, p_ref, exp_dtype)


def anomaly_attention(x, wq, wk, wv, ws, *, tq=None,
                      compute_dtype=jnp.bfloat16, p_dtype=jnp.bfloat16,
                      fast_exp=False):
    """x: (B, N, d); wq/wk/wv: (d, d_model); ws: (d, 1).  Returns (Z, P).

    compute_dtype: MXU input dtype (f32 accumulation).  bfloat16 (default) hits
      the native MXU path on v6e/v7x; pass float32 for exact PyTorch numerics.
    p_dtype: storage dtype of the prior P.  bfloat16 (default) halves the
      dominant B*N^2 HBM writeback (main lever on v5e/v6e).
    fast_exp: compute the softmax/gaussian exp in bf16 (doubles EUP throughput
      on v6e/v7x; keep False on v5e, whose EUP has no bf16 path).
    """
    B, N, d = x.shape
    d_model = wq.shape[1]
    compute_dtype = jnp.dtype(compute_dtype)
    p_dtype = jnp.dtype(p_dtype)
    exp_dtype = jnp.bfloat16 if fast_exp else jnp.float32

    # Fold the softmax 1/sqrt(d_model) scale into Wq (true d_model, pre-pad).
    wq = wq.astype(jnp.float32) * (1.0 / math.sqrt(float(d_model)))
    wk = wk.astype(jnp.float32)
    wv = wv.astype(jnp.float32)

    # Pad d_model to a multiple of 128: lane-dense Z stores, full MXU N-dim.
    # Padded weight columns are zero, so QK^T and P are unchanged.
    d_model_pad = _round_up(d_model, 128)
    if d_model_pad != d_model:
        wpad = ((0, 0), (0, d_model_pad - d_model))
        wq, wk, wv = jnp.pad(wq, wpad), jnp.pad(wk, wpad), jnp.pad(wv, wpad)

    # Generation-aware VMEM sizing (v5e/v6e: 128 MiB, v7x: 64 MiB).
    cap = _vmem_capacity_bytes()
    vmem_limit = min(int(cap * 0.8), cap - (8 << 20))
    budget = int(vmem_limit * 0.85)

    if tq is None:
        tq, n_rows = _choose_tq(N, d, d_model_pad, budget,
                                compute_dtype.itemsize, p_dtype.itemsize)
    else:
        n_rows = _round_up(N, tq)

    x_f32 = x.astype(jnp.float32)        # feeds sigma (and Q, cast in-kernel)
    x_tile_in = (x_f32 if n_rows == N else
                 jnp.pad(x_f32, ((0, 0), (0, n_rows - N), (0, 0)), mode="edge"))
    x_c = x.astype(compute_dtype)
    wq_c = wq.astype(compute_dtype)
    wk_c = wk.astype(compute_dtype)
    wv_c = wv.astype(compute_dtype)
    ws_f = ws.astype(jnp.float32)

    grid = (B, n_rows // tq)
    out_specs = [
        pl.BlockSpec((1, tq, d_model_pad), lambda b, j: (b, j, 0)),      # Z
        pl.BlockSpec((1, tq, N), lambda b, j: (b, j, 0)),                # P
    ]
    out_shape = (jax.ShapeDtypeStruct((B, n_rows, d_model_pad), jnp.float32),
                 jax.ShapeDtypeStruct((B, n_rows, N), p_dtype))

    if B == 1:
        # Single-batch: hoist the (cheap) K/V projections to XLA so both grid
        # axes are "parallel" and a v7x second TensorCore gets row tiles.
        k = jnp.einsum("bnd,de->bne", x_c, wk_c,
                       preferred_element_type=jnp.float32).astype(compute_dtype)
        v = jnp.einsum("bnd,de->bne", x_c, wv_c,
                       preferred_element_type=jnp.float32).astype(compute_dtype)
        kernel = functools.partial(_hoisted_kernel, exp_dtype)
        in_specs = [
            pl.BlockSpec((1, tq, d), lambda b, j: (b, j, 0)),            # x tile
            pl.BlockSpec((1, N, d_model_pad), lambda b, j: (b, 0, 0)),   # K
            pl.BlockSpec((1, N, d_model_pad), lambda b, j: (b, 0, 0)),   # V
            pl.BlockSpec((d, d_model_pad), lambda b, j: (0, 0)),         # Wq (scaled)
            pl.BlockSpec((d, 1), lambda b, j: (0, 0)),                   # Ws
        ]
        operands = (x_tile_in, k, v, wq_c, ws_f)
        scratch_shapes = []
        dims = ("parallel", "parallel")
    else:
        kernel = functools.partial(_fused_kernel, exp_dtype)
        in_specs = [
            # full window: block index constant in j -> re-fetched only when b
            # changes (Pallas skips the DMA on revisits).
            pl.BlockSpec((1, N, d), lambda b, j: (b, 0, 0)),
            pl.BlockSpec((1, tq, d), lambda b, j: (b, j, 0)),            # x tile
            pl.BlockSpec((d, d_model_pad), lambda b, j: (0, 0)),         # Wq (scaled)
            pl.BlockSpec((d, d_model_pad), lambda b, j: (0, 0)),         # Wk
            pl.BlockSpec((d, d_model_pad), lambda b, j: (0, 0)),         # Wv
            pl.BlockSpec((d, 1), lambda b, j: (0, 0)),                   # Ws
        ]
        operands = (x_c, x_tile_in, wq_c, wk_c, wv_c, ws_f)
        scratch_shapes = [pltpu.VMEM((2, N, d_model_pad), compute_dtype)]
        # K/V scratch is written at j == 0 -> the j axis must stay sequential.
        dims = ("parallel", "arbitrary")

    flops = 2 * B * ((2 * N + n_rows) * d * d_model_pad + n_rows * d
                     + 2 * n_rows * N * d_model_pad)
    transcendentals = 2 * B * n_rows * N
    bytes_accessed = (B * N * d * (4 + compute_dtype.itemsize)
                      + B * n_rows * d * 4
                      + 4 * d * (3 * d_model_pad + 1)
                      + B * n_rows * d_model_pad * 4
                      + B * n_rows * N * p_dtype.itemsize)

    z_full, p_full = pl.pallas_call(
        kernel,
        out_shape=out_shape,
        grid_spec=pltpu.PrefetchScalarGridSpec(
            num_scalar_prefetch=0, grid=grid,
            in_specs=in_specs, out_specs=out_specs,
            scratch_shapes=scratch_shapes),
        compiler_params=pltpu.CompilerParams(
            dimension_semantics=dims, vmem_limit_bytes=vmem_limit),
        cost_estimate=pl.CostEstimate(flops=flops,
                                      transcendentals=transcendentals,
                                      bytes_accessed=bytes_accessed),
    )(*operands)

    # Slice off d_model / row padding.
    return z_full[:, :N, :d_model], p_full[:, :N, :]


def reference(x, wq, wk, wv, ws):
    """Pure-JAX mirror of the PyTorch module (f32, highest matmul precision).
    Keeps the 1/(sqrt(2*pi)|sigma|) factor, which cancels in the row norm."""
    hp = jax.lax.Precision.HIGHEST
    q = jnp.einsum("bnd,de->bne", x, wq, precision=hp)
    k = jnp.einsum("bnd,de->bne", x, wk, precision=hp)
    v = jnp.einsum("bnd,de->bne", x, wv, precision=hp)
    sigma = jnp.einsum("bnd,de->bne", x, ws, precision=hp)          # (B, N, 1)
    d_model = q.shape[-1]
    qk = jnp.einsum("bnd,bmd->bnm", q, k, precision=hp) / math.sqrt(float(d_model))
    s = jax.nn.softmax(qk, axis=-1)
    z = jnp.einsum("bnm,bmd->bnd", s, v, precision=hp)

    n = x.shape[1]
    idx = jnp.arange(n, dtype=jnp.float32)
    dist = jnp.abs(idx[:, None] - idx[None, :])                     # (N, N)
    normalize = 1.0 / (math.sqrt(2.0 * math.pi) * jnp.abs(sigma))
    gauss = normalize * jnp.exp(-0.5 * jnp.square(dist[None] / sigma))
    p = gauss / jnp.sum(gauss, axis=-1, keepdims=True)
    return z, p


if __name__ == "__main__":
    # Small shapes consistent with the module: x is (B, N, d).
    B, N, d, d_model = 2, 8, 16, 32

    key = jax.random.PRNGKey(0)
    kx, kq, kk, kv_, ks = jax.random.split(key, 5)

    x = jax.random.normal(kx, (B, N, d), dtype=jnp.float32)
    # deterministic "nn.Linear(bias=False)"-style weights, pre-transposed (in, out)
    bound = 1.0 / math.sqrt(d)
    wq = jax.random.uniform(kq, (d, d_model), jnp.float32, -bound, bound)
    wk = jax.random.uniform(kk, (d, d_model), jnp.float32, -bound, bound)
    wv = jax.random.uniform(kv_, (d, d_model), jnp.float32, -bound, bound)
    ws = jax.random.uniform(ks, (d, 1), jnp.float32, -bound, bound)

    z_ref_, p_ref_ = reference(x, wq, wk, wv, ws)

    # Fused path (B >= 2): per-batch resident K/V scratch, bf16 MXU, bf16 P.
    z, p = anomaly_attention(x, wq, wk, wv, ws)
    jax.block_until_ready((z, p))
    assert z.shape == (B, N, d_model) and p.shape == (B, N, N)
    # Tolerances cover bf16 MXU inputs, bf16 P storage and the approx EUP
    # reciprocals used in the row normalizations.
    assert jnp.allclose(z, z_ref_, atol=2e-2, rtol=2e-2), "Z mismatch (fused)"
    assert jnp.allclose(p.astype(jnp.float32), p_ref_,
                        atol=1e-2, rtol=1e-2), "P mismatch (fused)"

    # Hoisted path (B == 1): K/V projected outside so both grid axes are
    # parallel (keeps a v7x second TensorCore busy for single-batch calls).
    z1, p1 = anomaly_attention(x[:1], wq, wk, wv, ws)
    jax.block_until_ready((z1, p1))
    assert jnp.allclose(z1, z_ref_[:1], atol=2e-2, rtol=2e-2), "Z mismatch (hoisted)"
    assert jnp.allclose(p1.astype(jnp.float32), p_ref_[:1],
                        atol=1e-2, rtol=1e-2), "P mismatch (hoisted)"

    print("KERNEL_OK")
</pallas_src>

<mosaic_0001>
module attributes {stable_mosaic.version = 11 : i64} {
  func.func @_fused_kernel(%arg0: i32, %arg1: i32, %arg2: memref<1x8x16xbf16, #tpu.memory_space<vmem>>, %arg3: memref<1x8x16xf32, #tpu.memory_space<vmem>>, %arg4: memref<16x128xbf16, #tpu.memory_space<vmem>>, %arg5: memref<16x128xbf16, #tpu.memory_space<vmem>>, %arg6: memref<16x128xbf16, #tpu.memory_space<vmem>>, %arg7: memref<16x1xf32, #tpu.memory_space<vmem>>, %arg8: memref<1x8x128xf32, #tpu.memory_space<vmem>>, %arg9: memref<1x8x8xbf16, #tpu.memory_space<vmem>>, %arg10: memref<2x8x128xbf16, #tpu.memory_space<vmem>>) attributes {dimension_semantics = [#tpu.dimension_semantics<parallel>, #tpu.dimension_semantics<arbitrary>], iteration_bounds = array<i64: 2, 1>, scalar_prefetch = 0 : i64, scratch_operands = 1 : i64, tpu.core_type = #tpu.core_type<tc>, window_params = [{transform_indices = @transform_0, window_bounds = array<i64: 1, 8, 16>}, {transform_indices = @transform_1, window_bounds = array<i64: 1, 8, 16>}, {pipeline_mode = #tpu.pipeline_mode<synchronous>, transform_indices = @transform_2, window_bounds = array<i64: 16, 128>}, {pipeline_mode = #tpu.pipeline_mode<synchronous>, transform_indices = @transform_3, window_bounds = array<i64: 16, 128>}, {pipeline_mode = #tpu.pipeline_mode<synchronous>, transform_indices = @transform_4, window_bounds = array<i64: 16, 128>}, {pipeline_mode = #tpu.pipeline_mode<synchronous>, transform_indices = @transform_5, window_bounds = array<i64: 16, 1>}, {transform_indices = @transform_6, window_bounds = array<i64: 1, 8, 128>}, {transform_indices = @transform_7, window_bounds = array<i64: 1, 8, 8>}]} {
    %c0_i32 = arith.constant 0 : i32
    %0 = arith.cmpi eq, %arg1, %c0_i32 : i32
    %1 = arith.extui %0 : i1 to i32
    %c0_i32_0 = arith.constant 0 : i32
    %2 = arith.cmpi ne, %1, %c0_i32_0 : i32
    scf.if %2 {
      %c0_25 = arith.constant 0 : index
      %c0_26 = arith.constant 0 : index
      %c0_27 = arith.constant 0 : index
      %57 = vector.load %arg2[%c0_25, %c0_26, %c0_27] : memref<1x8x16xbf16, #tpu.memory_space<vmem>>, vector<1x8x16xbf16>
      %58 = vector.shape_cast %57 : vector<1x8x16xbf16> to vector<8x16xbf16>
      %c0_28 = arith.constant 0 : index
      %c0_29 = arith.constant 0 : index
      %59 = vector.load %arg5[%c0_28, %c0_29] : memref<16x128xbf16, #tpu.memory_space<vmem>>, vector<16x128xbf16>
      %cst_30 = arith.constant dense<0.000000e+00> : vector<8x128xf32>
      %60 = tpu.matmul %58, %59, %cst_30 {dimension_numbers = #tpu.dot_dimension_numbers<[1], [0], [0], [1], [0, 0, 1, 1], [], []>} : vector<8x16xbf16>, vector<16x128xbf16>, vector<8x128xf32> -> vector<8x128xf32>
      %61 = arith.truncf %60 : vector<8x128xf32> to vector<8x128xbf16>
      %c0_31 = arith.constant 0 : index
      %c0_32 = arith.constant 0 : index
      %c0_33 = arith.constant 0 : index
      %62 = vector.load %arg10[%c0_31, %c0_32, %c0_33] : memref<2x8x128xbf16, #tpu.memory_space<vmem>>, vector<1x8x128xbf16>
      %63 = vector.shape_cast %62 : vector<1x8x128xbf16> to vector<8x128xbf16>
      %64 = vector.shape_cast %61 : vector<8x128xbf16> to vector<1x8x128xbf16>
      tpu.vector_store %arg10[%c0_31, %c0_32, %c0_33], %64 {strides = array<i32>} : memref<2x8x128xbf16, #tpu.memory_space<vmem>>, vector<1x8x128xbf16>,
      %c0_34 = arith.constant 0 : index
      %c0_35 = arith.constant 0 : index
      %65 = vector.load %arg6[%c0_34, %c0_35] : memref<16x128xbf16, #tpu.memory_space<vmem>>, vector<16x128xbf16>
      %cst_36 = arith.constant dense<0.000000e+00> : vector<8x128xf32>
      %66 = tpu.matmul %58, %65, %cst_36 {dimension_numbers = #tpu.dot_dimension_numbers<[1], [0], [0], [1], [0, 0, 1, 1], [], []>} : vector<8x16xbf16>, vector<16x128xbf16>, vector<8x128xf32> -> vector<8x128xf32>
      %67 = arith.truncf %66 : vector<8x128xf32> to vector<8x128xbf16>
      %c1_37 = arith.constant 1 : index
      %c0_38 = arith.constant 0 : index
      %c0_39 = arith.constant 0 : index
      %68 = vector.load %arg10[%c1_37, %c0_38, %c0_39] : memref<2x8x128xbf16, #tpu.memory_space<vmem>>, vector<1x8x128xbf16>
      %69 = vector.shape_cast %68 : vector<1x8x128xbf16> to vector<8x128xbf16>
      %70 = vector.shape_cast %67 : vector<8x128xbf16> to vector<1x8x128xbf16>
      tpu.vector_store %arg10[%c1_37, %c0_38, %c0_39], %70 {strides = array<i32>} : memref<2x8x128xbf16, #tpu.memory_space<vmem>>, vector<1x8x128xbf16>,
    } else {
    }
    %c0 = arith.constant 0 : index
    %c0_1 = arith.constant 0 : index
    %c0_2 = arith.constant 0 : index
    %3 = vector.load %arg3[%c0, %c0_1, %c0_2] : memref<1x8x16xf32, #tpu.memory_space<vmem>>, vector<1x8x16xf32>
    %4 = vector.shape_cast %3 : vector<1x8x16xf32> to vector<8x16xf32>
    %c0_3 = arith.constant 0 : index
    %c0_4 = arith.constant 0 : index
    %c0_5 = arith.constant 0 : index
    %5 = vector.load %arg10[%c0_3, %c0_4, %c0_5] : memref<2x8x128xbf16, #tpu.memory_space<vmem>>, vector<1x8x128xbf16>
    %6 = vector.shape_cast %5 : vector<1x8x128xbf16> to vector<8x128xbf16>
    %c1 = arith.constant 1 : index
    %c0_6 = arith.constant 0 : index
    %c0_7 = arith.constant 0 : index
    %7 = vector.load %arg10[%c1, %c0_6, %c0_7] : memref<2x8x128xbf16, #tpu.memory_space<vmem>>, vector<1x8x128xbf16>
    %8 = vector.shape_cast %7 : vector<1x8x128xbf16> to vector<8x128xbf16>
    %c8_i32 = arith.constant 8 : i32
    %9 = arith.muli %arg1, %c8_i32 : i32
    %10 = arith.truncf %4 : vector<8x16xf32> to vector<8x16xbf16>
    %c0_8 = arith.constant 0 : index
    %c0_9 = arith.constant 0 : index
    %11 = vector.load %arg4[%c0_8, %c0_9] : memref<16x128xbf16, #tpu.memory_space<vmem>>, vector<16x128xbf16>
    %cst = arith.constant dense<0.000000e+00> : vector<8x128xf32>
    %12 = tpu.matmul %10, %11, %cst {dimension_numbers = #tpu.dot_dimension_numbers<[1], [0], [0], [1], [0, 0, 1, 1], [], []>} : vector<8x16xbf16>, vector<16x128xbf16>, vector<8x128xf32> -> vector<8x128xf32>
    %13 = arith.truncf %12 : vector<8x128xf32> to vector<8x128xbf16>
    %c0_10 = arith.constant 0 : index
    %c0_11 = arith.constant 0 : index
    %14 = vector.load %arg7[%c0_10, %c0_11] : memref<16x1xf32, #tpu.memory_space<vmem>>, vector<16x1xf32>
    %cst_12 = arith.constant dense<0.000000e+00> : vector<8x1xf32>
    %15 = tpu.matmul %4, %14, %cst_12 {dimension_numbers = #tpu.dot_dimension_numbers<[1], [0], [0], [1], [0, 0, 1, 1], [], []>} : vector<8x16xf32>, vector<16x1xf32>, vector<8x1xf32> -> vector<8x1xf32>
    %cst_13 = arith.constant dense<0.000000e+00> : vector<8x8xf32>
    %16 = tpu.matmul %13, %6, %cst_13 {dimension_numbers = #tpu.dot_dimension_numbers<[1], [1], [0], [0], [0, 0, 1, 0], [], []>} : vector<8x128xbf16>, vector<8x128xbf16>, vector<8x8xf32> -> vector<8x8xf32>
    %cst_14 = arith.constant dense<0xFF800000> : vector<8xf32>
    %17 = vector.multi_reduction <maximumf>, %16, %cst_14 [1] : vector<8x8xf32> to vector<8xf32>
    %18 = vector.shape_cast %17 : vector<8xf32> to vector<8x1xf32>
    %19 = vector.broadcast %18 : vector<8x1xf32> to vector<8x8xf32>
    %20 = arith.subf %16, %19 : vector<8x8xf32>
    %21 = math.exp %20 : vector<8x8xf32>
    %cst_15 = arith.constant dense<0.000000e+00> : vector<8xf32>
    %22 = vector.multi_reduction <add>, %21, %cst_15 [1] : vector<8x8xf32> to vector<8xf32>
    %23 = vector.shape_cast %22 : vector<8xf32> to vector<8x1xf32>
    %24 = tpu.reciprocal %23 {approx = true} : vector<8x1xf32> -> vector<8x1xf32>
    %25 = vector.broadcast %24 : vector<8x1xf32> to vector<8x8xf32>
    %26 = arith.mulf %21, %25 : vector<8x8xf32>
    %27 = arith.truncf %26 : vector<8x8xf32> to vector<8x8xbf16>
    %cst_16 = arith.constant dense<0.000000e+00> : vector<8x128xf32>
    %28 = tpu.matmul %27, %8, %cst_16 {dimension_numbers = #tpu.dot_dimension_numbers<[1], [0], [0], [1], [0, 0, 1, 1], [], []>} : vector<8x8xbf16>, vector<8x128xbf16>, vector<8x128xf32> -> vector<8x128xf32>
    %c0_17 = arith.constant 0 : index
    %c0_18 = arith.constant 0 : index
    %c0_19 = arith.constant 0 : index
    %29 = vector.load %arg8[%c0_17, %c0_18, %c0_19] : memref<1x8x128xf32, #tpu.memory_space<vmem>>, vector<1x8x128xf32>
    %30 = vector.shape_cast %29 : vector<1x8x128xf32> to vector<8x128xf32>
    %31 = vector.shape_cast %28 : vector<8x128xf32> to vector<1x8x128xf32>
    tpu.vector_store %arg8[%c0_17, %c0_18, %c0_19], %31 {strides = array<i32>} : memref<1x8x128xf32, #tpu.memory_space<vmem>>, vector<1x8x128xf32>,
    %32 = tpu.iota {dimensions = array<i32: 0>} : vector<8x1xi32>
    %33 = vector.broadcast %9 : i32 to vector<8x1xi32>
    %34 = arith.addi %32, %33 : vector<8x1xi32>
    %35 = arith.sitofp %34 : vector<8x1xi32> to vector<8x1xf32>
    %36 = tpu.iota {dimensions = array<i32: 1>} : vector<1x8xi32>
    %37 = arith.sitofp %36 : vector<1x8xi32> to vector<1x8xf32>
    %38 = vector.broadcast %35 : vector<8x1xf32> to vector<8x8xf32>
    %39 = vector.broadcast %37 : vector<1x8xf32> to vector<8x8xf32>
    %40 = arith.subf %38, %39 : vector<8x8xf32>
    %41 = arith.mulf %15, %15 : vector<8x1xf32>
    %cst_20 = arith.constant -5.000000e-01 : f32
    %42 = vector.broadcast %cst_20 : f32 to vector<8x1xf32>
    %43 = arith.divf %42, %41 : vector<8x1xf32>
    %44 = arith.mulf %40, %40 : vector<8x8xf32>
    %45 = vector.broadcast %43 : vector<8x1xf32> to vector<8x8xf32>
    %46 = arith.mulf %44, %45 : vector<8x8xf32>
    %47 = math.exp %46 : vector<8x8xf32>
    %cst_21 = arith.constant dense<0.000000e+00> : vector<8xf32>
    %48 = vector.multi_reduction <add>, %47, %cst_21 [1] : vector<8x8xf32> to vector<8xf32>
    %49 = vector.shape_cast %48 : vector<8xf32> to vector<8x1xf32>
    %50 = tpu.reciprocal %49 {approx = true} : vector<8x1xf32> -> vector<8x1xf32>
    %51 = vector.broadcast %50 : vector<8x1xf32> to vector<8x8xf32>
    %52 = arith.mulf %47, %51 : vector<8x8xf32>
    %53 = arith.truncf %52 : vector<8x8xf32> to vector<8x8xbf16>
    %c0_22 = arith.constant 0 : index
    %c0_23 = arith.constant 0 : index
    %c0_24 = arith.constant 0 : index
    %54 = vector.load %arg9[%c0_22, %c0_23, %c0_24] : memref<1x8x8xbf16, #tpu.memory_space<vmem>>, vector<1x8x8xbf16>
    %55 = vector.shape_cast %54 : vector<1x8x8xbf16> to vector<8x8xbf16>
    %56 = vector.shape_cast %53 : vector<8x8xbf16> to vector<1x8x8xbf16>
    tpu.vector_store %arg9[%c0_22, %c0_23, %c0_24], %56 {strides = array<i32>} : memref<1x8x8xbf16, #tpu.memory_space<vmem>>, vector<1x8x8xbf16>,
    return
  }
  func.func @transform_0(%arg0: i32, %arg1: i32) -> (i32, i32, i32) {
    %c0_i32 = arith.constant 0 : i32
    %c0_i32_0 = arith.constant 0 : i32
    %c0_i32_1 = arith.constant 0 : i32
    return %arg0, %c0_i32, %c0_i32_0 : i32, i32, i32
  }
  func.func @transform_1(%arg0: i32, %arg1: i32) -> (i32, i32, i32) {
    %c0_i32 = arith.constant 0 : i32
    %c0_i32_0 = arith.constant 0 : i32
    return %arg0, %arg1, %c0_i32 : i32, i32, i32
  }
  func.func @transform_2(%arg0: i32, %arg1: i32) -> (i32, i32) {
    %c0_i32 = arith.constant 0 : i32
    %c0_i32_0 = arith.constant 0 : i32
    %c0_i32_1 = arith.constant 0 : i32
    return %c0_i32, %c0_i32_0 : i32, i32
  }
  func.func @transform_3(%arg0: i32, %arg1: i32) -> (i32, i32) {
    %c0_i32 = arith.constant 0 : i32
    %c0_i32_0 = arith.constant 0 : i32
    %c0_i32_1 = arith.constant 0 : i32
    return %c0_i32, %c0_i32_0 : i32, i32
  }
  func.func @transform_4(%arg0: i32, %arg1: i32) -> (i32, i32) {
    %c0_i32 = arith.constant 0 : i32
    %c0_i32_0 = arith.constant 0 : i32
    %c0_i32_1 = arith.constant 0 : i32
    return %c0_i32, %c0_i32_0 : i32, i32
  }
  func.func @transform_5(%arg0: i32, %arg1: i32) -> (i32, i32) {
    %c0_i32 = arith.constant 0 : i32
    %c0_i32_0 = arith.constant 0 : i32
    %c0_i32_1 = arith.constant 0 : i32
    return %c0_i32, %c0_i32_0 : i32, i32
  }
  func.func @transform_6(%arg0: i32, %arg1: i32) -> (i32, i32, i32) {
    %c0_i32 = arith.constant 0 : i32
    %c0_i32_0 = arith.constant 0 : i32
    return %arg0, %arg1, %c0_i32 : i32, i32, i32
  }
  func.func @transform_7(%arg0: i32, %arg1: i32) -> (i32, i32, i32) {
    %c0_i32 = arith.constant 0 : i32
    %c0_i32_0 = arith.constant 0 : i32
    return %arg0, %arg1, %c0_i32 : i32, i32, i32
  }
}

</mosaic_0001>

<bundles_post_ra>
// kernel: tpu_custom_call.1
= control target key start
LH: loop header
LB: loop body
LE: loop exit
PB: predicated region body
PF: predicated region fallthrough
CT: control target
= control target key end

     0   :  { %s1591_s0 = inlined_call_operand.hbm [shape: bf16[2,8,16], index: 0, kind: input, shape index: {}]   ;;  %s1592_s1 = inlined_call_operand.vmem [shape: f32[2,8,16], index: 1, kind: input, shape index: {}]   ;;  %s1593_s2 = inlined_call_operand.vmem [shape: bf16[16,128], index: 2, kind: input, shape index: {}]   ;;  %s1594_s3 = inlined_call_operand.hbm [shape: bf16[16,128], index: 3, kind: input, shape index: {}]   ;;  %s1595_s4 = inlined_call_operand.vmem [shape: bf16[16,128], index: 4, kind: input, shape index: {}]   ;;  %s1596_s5 = inlined_call_operand.vmem [shape: f32[16,1], index: 5, kind: input, shape index: {}]   ;;  %s1597_s6 = inlined_call_operand.hbm [shape: f32[2,8,128], index: 6, kind: output, shape index: {0}]   ;;  %s1598_s7 = inlined_call_operand.hbm [shape: bf16[2,8,8], index: 7, kind: output, shape index: {1}]  }
   0x1   :  { %1604 = sst [smem:[#allocation16_spill]] %s1594_s3 }
   0x2   :  { %13 = vsyncpa [#allocation4], 0 }
   0x3   :  { %15 = vsyncpa [#allocation4 + $0x1], 0 }
   0x4   :  { %16 = vsyncpa [#allocation7], 0 }
   0x5   :  { %17 = vsyncpa [#allocation5], 0 }
   0x6   :  { %19 = vsyncpa [#allocation5 + $0x1], 0 }
   0x7   :  { %20 = vsyncpa [#allocation10], 0 }
   0x8   :  { %22 = vsyncpa [#allocation10 + $0x1], 0  ;;  %s1317_s24 = smov 0   ;;  %s1319_s25 = smov 0  }
   0x9   :  { %s1321_s26 = smov 0   ;;  %s1323_s27 = smov 0  }
   0xa   :  { %s1325_s28 = smov 0   ;;  %s1327_s29 = smov 0  }
   0xb LB: > { %s910_s30 = sadd.s32 4294967295, %s1265_s29   ;;  %s911_s8 = sadd.s32 4294967294, %s1265_s29   ;;  %s1265_s29 = sphi %s1327_s29, %s28_s29   ;;  %s1261_s28 = sphi %s1325_s28, %s1627_s28   ;;  %s1257_s27 = sphi %s1323_s27, %s1626_s27   ;;  %s1253_s26 = sphi %s1321_s26, %s1625_s26   ;;  %s1249_s25 = sphi %s1319_s25, %s1624_s25   ;;  %s1245_s24 = sphi %s1317_s24, %s1623_s24  }
   0xc   : > { %p60_p0 = scmp.ne.s32.totalorder %s1249_s25, %s1245_s24  ;;  %p1351_p1 = scmp.eq.s32.totalorder %s910_s30, 0 }
   0xd   : > { %p1355_p2 = scmp.eq.s32.totalorder %s910_s30, 1  ;;  %p204_p3 = scmp.eq.s32.totalorder %s911_s8, 1 }
   0xe   : > { %s1605_s9 = scalar_select %p1351_p1, 1, 0 }
   0xf   : > { %s1606_s10 = scalar_select %p1355_p2, 1, 0 }
  0x10   : > { %p1361_p4 = por %p1351_p1, %p60_p0  ;;  %p912_p5 = scmp.ge.s32.totalorder %s1265_s29, 1 }
  0x11   : > { %p1366_p6 = por %p204_p3, %p60_p0  ;;  %p239_p7 = scmp.lt.s32.totalorder %s1265_s29, 3 }
  0x12   : > { %s1607_s11 = scalar_select %p1361_p4, 1, 0 }
  0x13   : > { %s1608_s12 = scalar_select %p1366_p6, 1, 0 }
  0x14   : > { %p1371_p8 = pnand %p912_p5, %p239_p7  ;;  %s1267_s14 = smov [#allocation6]  }
  0x15   : > { %s254_s15 = sshll.u32 %s1267_s14, 4  ;;  %s40_s17 = sadd.s32 1, %s1261_s28  ;;  %s255_s15 = int_to_ptr.vmem [resolvable:$true] %s254_s15 }
  0x16   : > { %s1609_s13 = scalar_select %p1371_p8, 1, 0 }
  0x17   : > { %p1000_p9 = pneg %p1371_p8  ;;  %s1611_s3 = sld [smem:[#allocation16_spill]] }
  0x19   : > { %p1380_p11 = pnand %p1000_p9, %p1351_p1 }
  0x1b   : > { %p1091_p13 = pneg %p1380_p11 }
  0x1d   : > { %s1089_s20 = scalar_lea.hbm %s1611_s3, 128 }
  0x1e   : > { %p1090_p12 = scmp.ne.s32.totalorder %s1611_s3, %s1089_s20  ;;  %p1096_p5 = scmp.lt.u32.totalorder %s1089_s20, %s1611_s3 }
  0x20   : > { %p1092_p0 = pnand %p1091_p13, %p1090_p12 }
  0x22   : > { %p1093_p3 = pneg %p1092_p0 }
  0x24   : > { %p1098_p7 = pnand %p1096_p5, %p1093_p3 }
  0x26   : > { %1101 = shalt.err (!%p1098_p7)
}
  0x27   : > { %s1102_s8 = scalar_lea.vmem %s255_s15, 128  ;;  %p1110_p1 = scmp.lt.s32.totalorder %s255_s15, %s255_s15 }
  0x28   : > { %p1103_p9 = scmp.ne.s32.totalorder %s255_s15, %s1102_s8  ;;  %p1111_p4 = scmp.lt.s32.totalorder %s1102_s8, %s1102_s8 }
  0x2a   : > { %p1105_p10 = pnand %p1103_p9, %p1091_p13  ;;  %p1112_p8 = por %p1111_p4, %p1110_p1 }
  0x2c   : > { %p1106_p6 = pneg %p1105_p10 }
  0x2e   : > { %p1113_p2 = pnand %p1112_p8, %p1106_p6 }
  0x30   : > { %1116 = shalt.err (!%p1113_p2)
}
  0x31   : > { %s1268_s14 = smov 64   ;;  %s1269_s18 = smov 4  }
  0x32   : > { %1003 = dma.hbm_to_vmem [thread:$0]  (!%p1380_p11), %s1611_s3, 128, %s255_s15, [#allocation7], %s1268_s14, %s1268_s14, %s1269_s18  }
  0x33   : > { %p42_p1 = scmp.ge.s32.totalorder %s40_s17, 2  ;;  %s47_s21 = sadd.s32 1, %s1253_s26 }
  0x34   : > { %p54_p2 = scmp.ne.s32.totalorder %s1253_s26, %s1249_s25  ;;  %p55_p4 = scmp.eq.s32.totalorder %s1265_s29, 0 }
  0x35   : > { %s1629_s17 = smov (%p42_p1, %s40_s17), 0  ;;  %p1614_p8 = scmp.ne.s32.totalorder %s1606_s10, 0 }
  0x36   : > { %1612 = sst [smem:[#allocation15_spill]] %s1629_s17  ;;  %p1407_p6 = por %p55_p4, %p54_p2 }
  0x37   : > { %p1413_p10 = por %p1614_p8, %p54_p2  ;;  %s44_s16 = ssub.s32 %s1261_s28, %s1629_s17 }
  0x38   : > { %p1016_p12 = scmp.lt.s32.totalorder %s1265_s29, 2  ;;  %p45_p11 = scmp.eq.s32.totalorder %s44_s16, 0 }
  0x39   : > { %s274_s15 = sand.u32 1, %s1253_s26   ;;  %s916_s14 = sshll.u32 %s1261_s28, 6 }
  0x3a   : > { %s915_s30 = sshll.u32 %s274_s15, 2  ;;  %s1428_s20 = scalar_lea.hbm %s1591_s0, %s916_s14 }
  0x3b   : > { %s1422_s8 = scalar_select %p45_p11, %s1253_s26, %s47_s21  }
  0x3c   : > { %s278_s10 = scalar_lea.vmem [#allocation3], %s915_s30  ;;  %p1434_p13 = pnand %p1016_p12, %p1407_p6 }
  0x3d   : > { %s285_s3 = sshll.u32 %s278_s10, 4  ;;  %s275_s21 = scalar_lea.sflag [#allocation4], %s274_s15  ;;  %s1430_s3 = int_to_ptr.vmem [resolvable:$true] %s285_s3 }
  0x3e   : > { %s1117_s17 = scalar_lea.hbm %s1428_s20, 64  ;;  %p1119_p3 = pneg %p1434_p13 }
  0x3f   : > { %p1118_p0 = scmp.ne.s32.totalorder %s1428_s20, %s1117_s17  ;;  %s1122_s18 = scalar_lea.hbm %s1591_s0, 128 }
  0x40   : > { %p1123_p9 = scmp.lt.u32.totalorder %s1428_s20, %s1591_s0  ;;  %p1124_p1 = scmp.lt.u32.totalorder %s1122_s18, %s1117_s17 }
  0x41   : > { %p1120_p5 = pnand %p1119_p3, %p1118_p0  ;;  %p1126_p4 = scmp.lt.u32.totalorder %s1117_s17, %s1428_s20 }
  0x42   : > { %p1125_p2 = por %p1124_p1, %p1123_p9 }
  0x43   : > { %p1121_p7 = pneg %p1120_p5 }
  0x44   : > { %p1127_p6 = por %p1126_p4, %p1125_p2 }
  0x46   : > { %p1128_p8 = pnand %p1127_p6, %p1121_p7 }
  0x48   : > { %1131 = shalt.err (!%p1128_p8)
}
  0x49   : > { %s1132_s15 = scalar_lea.vmem %s1430_s3, 64  ;;  %s1270_s10 = smov [#allocation3]  }
  0x4a   : > { %p1133_p12 = scmp.ne.s32.totalorder %s1430_s3, %s1132_s15  ;;  %s1137_s30 = sshll.u32 %s1270_s10, 4  ;;  %s1138_s30 = int_to_ptr.vmem [resolvable:$false] %s1137_s30 }
  0x4b   : > { %s1139_s14 = scalar_lea.vmem %s1138_s30, 128  ;;  %p1140_p5 = scmp.lt.s32.totalorder %s1430_s3, %s1138_s30 }
  0x4c   : > { %p1135_p11 = pnand %p1133_p12, %p1119_p3  ;;  %p1141_p9 = scmp.lt.s32.totalorder %s1139_s14, %s1132_s15 }
  0x4e   : > { %p1136_p0 = pneg %p1135_p11  ;;  %p1142_p1 = por %p1141_p9, %p1140_p5 }
  0x50   : > { %p1143_p2 = pnand %p1142_p1, %p1136_p0 }
  0x52   : > { %1146 = shalt.err (!%p1143_p2)
}
  0x53   : > { %1007 = dma.hbm_to_vmem [thread:$0]  (!%p1434_p13), %s1428_s20, 64, %s1430_s3, %s275_s21  }
  0x54   : > { %p1617_p7 = scmp.ne.s32.totalorder %s1609_s13, 0 }
  0x55   : > { %s1466_s17 = sand.u32 (!%p1617_p7), 1, %s1249_s25   ;;  %p1618_p3 = scmp.ne.s32.totalorder (!%p1617_p7), %s1607_s11, 0 }
  0x56   : > { %304 = sbr.rel (%p1617_p7) target bundleno = 1087 (0x43f), region = 44  ;;  %s918_s18 = sshll.u32 (!%p1617_p7), %s1466_s17, 2 }
  0x57   : > { %s307_s22 = scalar_lea.sflag (!%p1617_p7), [#allocation4], %s1466_s17  ;;  %s310_s19 = scalar_lea.vmem (!%p1617_p7), [#allocation3], %s918_s18 }
  0x5d   : > { %1228 = dma.done.wait (%p1618_p3), %s307_s22, 64  }
  0x5e   : > { %1230 = vsyncadd (%p1618_p3), %s307_s22, 4294967232  ;;  %p1619_p13 = scmp.ne.s32.totalorder %s1605_s9, 0 }
  0x60   : > { %1232 = dma.done.wait (%p1619_p13), [#allocation7], 128  }
  0x61   : > { %1234 = vsyncadd (%p1619_p13), [#allocation7], 4294967168  ;;  %p357_p4 = scmp.lt.s32.totalorder %s1257_s27, 1  ;;  %v1271_v0 = vmov 0.0   ;;  %vm1272_vm0 = vmmov 0   ;;  %v1076_v1 = vld [vmem:[#allocation6] sm:$0xff]   ;;  %v710_v38 = vlaneseq }
  0x62   : > { %950 = vmatprep.subr.bf16.mxu0 %v1271_v0  ;;  %952 = vmatprep.mubr.msk.bf16.mxu0 %vm1272_vm0, %v1271_v0  ;;  %v369_v2 = vld [vmem:[%s310_s19] sm:$0xf]  ;;  %vm378_vm1 = vcmask 130048   ;;  %v1077_v3 = vld [vmem:[%s1593_s2] sm:$0xff]   ;;  %v1273_v10 = vmov 0.0|0.0   ;;  %v1274_v22 = vmov 0  }
  0x63   : > { %956 = vmatprep.subr.bf16.mxu1 %v1271_v0  ;;  %958 = vmatprep.mubr.msk.bf16.mxu1 %vm1272_vm0, %v1271_v0  ;;  %s358_s3 = scalar_select %p357_p4, %s1257_s27, 1  ;;  %v1078_v6 = vld [vmem:[%s1595_s4] sm:$0xff]   ;;  %v535_v8 = vld [vmem:[%s1596_s5 + $0x8] sm:$0xff]  ;;  %vm649_vm2 = vcmask 64512   ;;  %vm665_vm3 = vcmask 1043456   ;;  %v711_v41 = vshrl.u32 %v710_v38, 7 }
  0x64   : > { %951 = vmatpush3.bf16.msra.mxu0 %v1076_v1  ;;  %v534_v7 = vld [vmem:[%s1596_s5] sm:$0xff]  ;;  %957 = vmatpush3.bf16.msra.mxu1 %v1078_v6  ;;  %v716_v42 = vand.u32 127, %v710_v38  ;;  %vm737_vm4 = vcmask 60416  }
  0x65   : > { %s922_s11 = sshll.u32 %s358_s3, 3  ;;  %962 = vmatprep.subr.bf16.mxu0 %v1271_v0  ;;  %v988_v9 = vpack.c.bf16 %v535_v8, %v534_v7  ;;  %987 = vmatprep.subr.bf16.mxu1 %v1273_v10  ;;  %v714_v43 = vcvt.s32.f32 %v711_v41  ;;  %s356_s3 = scalar_lea.vmem [#allocation9], %s918_s18 }
  0x66   : > { %s363_s21 = scalar_lea.vmem %s1592_s1, %s922_s11  ;;  %1074 = vset.pattern.permute.xlu1 %v1274_v22  ;;  %1075 = vset.pattern.permute.xlu0 %v1274_v22  ;;  %v717_v44 = vcvt.s32.f32 %v716_v42  ;;  %s934_s11 = sshll.u32 %s1257_s27, 6 }
  0x67   : > { %953 = vmatmul.mubr.msk.bf16.vlgmr.msra.gmra.mrb[0].mxu0 %vm378_vm1, %v369_v2  ;;  %v475_v4 = vld [vmem:[%s363_s21] sm:$0xff]  ;;  %959 = vmatmul.mubr.msk.bf16.vlgmr.msra.gmra.mrb[0].mxu1 %vm378_vm1, %v369_v2  ;;  %s773_s13 = sshll.u32 %s356_s3, 4  ;;  %s1517_s16 = scalar_lea.hbm %s1598_s7, %s934_s11  ;;  %s774_s13 = int_to_ptr.vmem [resolvable:$true] %s773_s13 }
  0x68   : > { %963 = vmatpush3.bf16.msra.mxu0 %v1077_v3  ;;  %964 = vmatprep.mubr.msk.bf16.mxu0 %vm1272_vm0, %v1271_v0  ;;  %v480_v5 = vpack.c.bf16 %v475_v4, %v475_v4  ;;  %v718_v45 = vsub.f32 %v714_v43, %v717_v44  ;;  %s745_s21 = scalar_lea.sflag [#allocation10], %s1466_s17  ;;  %s1147_s15 = scalar_lea.vmem %s774_s13, 64 }
  0x69   : > { %975 = vmatprep.subr.bf16.mxu0 %v1271_v0  ;;  %989 = vmatpush3.bf16.msra.mxu1 %v988_v9  ;;  %p1148_p6 = scmp.ne.s32.totalorder %s774_s13, %s1147_s15  ;;  %s1275_s18 = smov [#allocation9]  }
  0x6a   : > { %972 = vmatprep.mubr.msk.f32.mxu1 %vm1272_vm0, %v1271_v0  ;;  %981 = vmatprep.subr.bf16.mxu1 %v1271_v0  ;;  %v722_v47 = vmul.f32 %v718_v45, %v718_v45  ;;  %s1151_s10 = sshll.u32 %s1275_s18, 4  ;;  %s1152_s10 = int_to_ptr.vmem [resolvable:$false] %s1151_s10 }
  0x6b   : > { %p1149_p8 = pnand %p1148_p6, %p1413_p10  ;;  %s1153_s30 = scalar_lea.vmem %s1152_s10, 128 }
  0x6c   : > { %p1154_p11 = scmp.lt.s32.totalorder %s774_s13, %s1152_s10  ;;  %p1155_p0 = scmp.lt.s32.totalorder %s1153_s30, %s1147_s15 }
  0x6d   : > { %p1150_p12 = pneg %p1149_p8 }
  0x6e   : > { %p1156_p5 = por %p1155_p0, %p1154_p11 }
  0x6f   : > { %965 = vmatmul.mubr.msk.bf16.vlgmr.msra.gmra.mrb[4].mxu0 %vm378_vm1, %v480_v5  ;;  %973 = vmatmul.mubr.msk.f32.vlgmr.msra.gmra.mrb[4].mxu1 %vm378_vm1, %v475_v4 }
  0x70   : > { %977 = vmatprep.mubr.msk.bf16.mxu0 %vm1272_vm0, %v1271_v0  ;;  %983 = vmatprep.mubr.msk.bf16.mxu1 %vm1272_vm0, %v1271_v0  ;;  %p1157_p9 = pnand %p1156_p5, %p1150_p12 }
 0x13a   : > { %v416_v11 = vpop.f32.mrb[0].mxu0  ;;  %v466_v23 = vpop.f32.mrb[0].mxu1 }
 0x13b   : > { %v422_v12 = vpack.c.bf16 %v416_v11, %v416_v11  ;;  %v954_v13 = vpop.f32.mrb[1].mxu0  ;;  %v472_v24 = vpack.c.bf16 %v466_v23, %v466_v23  ;;  %v960_v25 = vpop.f32.mrb[1].mxu1 }
 0x13c   : > { %v419_v14 = vpop.f32.mrb[2].mxu0  ;;  %v469_v26 = vpop.f32.mrb[2].mxu1 }
 0x13d   : > { %423 = vst [vmem:[#allocation2] sm:$0xf] %v422_v12  ;;  %v955_v15 = vpop.f32.mrb[3].mxu0  ;;  %474 = vst [vmem:[#allocation2 + $0x4] sm:$0xf] %v472_v24  ;;  %v961_v27 = vpop.f32.mrb[3].mxu1 }
 0x142   : > { %v527_v16 = vpop.f32.mrb[4].mxu0  ;;  %v605_v28 = vpop.f32.mrb[4].mxu1 }
 0x143   : > { %v966_v17 = vpop.f32.mrb[5].mxu0  ;;  %v533_v21 = vpack.c.bf16 %v527_v16, %v527_v16  ;;  %v719_v29 = vmul.f32 %v605_v28, %v605_v28  ;;  %v974_v30 = vpop.f32.mrb[5].mxu1 }
 0x144   : > { %v476_v18 = vld [vmem:[#allocation2] sm:$0xf]  ;;  %v530_v19 = vpop.f32.mrb[6].mxu0  ;;  %v478_v39 = vld [vmem:[#allocation2 + $0x4] sm:$0xf] }
 0x145   : > { %976 = vmatpush3.bf16.xpose.msra.mxu0 %v476_v18  ;;  %v967_v20 = vpop.f32.mrb[7].mxu0  ;;  %1079 = vrcp.f32 %v719_v29  ;;  %v667_v40 = vsel %vm665_vm3, %v478_v39, 0 }
 0x146   : > { %982 = vmatpush3.bf16.msra.mxu1 %v667_v40 }
 0x14c   : > { %978 = vmatmul.mubr.bf16.vlgmr.msra.gmra.mrb[8].mxu0 %v533_v21 }
 0x14f   : > { %v1080_v31 = vpop.eup %1079 }
 0x150   : > { %v721_v32 = vmul.f32 -0.5, %v1080_v31 }
 0x152   : > { %725 = vperm.xlu1 %1074, %v721_v32  }
 0x1d1   : > { %v726_v46 = vpop.permute.xlu1 %725 }
 0x1d2   : > { %v728_v48 = vmul.f32 %v726_v46, %v722_v47 }
 0x1d4   : > { %v729_v49 = vmul.f32 1.442695, %v728_v48 }
 0x1d6   : > { %1081 = vpow2.f32 %v729_v49 }
 0x1e0   : > { %v1082_v50 = vpop.eup %1081 }
 0x1e1   : > { %v731_v51 = vsel %vm649_vm2, %v1082_v50, 0.0 }
 0x1e2   : > { %732 = vadd.xlane.f32.xlu1 %v731_v51 }
 0x21f   : > { %v643_v33 = vpop.f32.mrb[8].mxu0 }
 0x220   : > { %v979_v34 = vpop.f32.mrb[9].mxu0  ;;  %v650_v35 = vsel %vm649_vm2, %v643_v33, -inf }
 0x221   : > { %651 = vmax.xlane.f32.xlu0 %v650_v35  ;;  %v646_v36 = vpop.f32.mrb[10].mxu0 }
 0x222   : > { %v980_v37 = vpop.f32.mrb[11].mxu0 }
 0x26f   : > { %v733_v57 = vpop.xlane.xlu1 %732 }
 0x2ae   : > { %v652_v52 = vpop.xlane.xlu0 %651 }
 0x2af   : > { %v653_v53 = vsub.f32 %v643_v33, %v652_v52 }
 0x2b1   : > { %v654_v54 = vmul.f32 1.442695, %v653_v53 }
 0x2b3   : > { %1083 = vpow2.f32 %v654_v54 }
 0x2b4   : > { %1085 = vrcp.f32 %v733_v57 }
 0x2bd   : > { %v1084_v55 = vpop.eup %1083 }
 0x2be   : > { %v656_v56 = vsel %vm649_vm2, %v1084_v55, 0.0  ;;  %v1086_v58 = vpop.eup %1085 }
 0x2bf   : > { %657 = vadd.xlane.f32.xlu0 %v656_v56  ;;  %v735_v59 = vmul.f32 %v1086_v58, %v1082_v50 }
 0x2c1   : > { %v736_v60 = vpack.c.bf16 %v735_v59, %v735_v59 }
 0x2c3   : > { %738 = vst.msk [vmem:[%s356_s3] sm:$0xf] %vm737_vm4, %v736_v60 }
 0x34c   : > { %v658_v61 = vpop.xlane.xlu0 %657 }
 0x34d   : > { %1087 = vrcp.f32 %v658_v61 }
 0x357   : > { %v1088_v62 = vpop.eup %1087 }
 0x358   : > { %v660_v63 = vmul.f32 %v1088_v62, %v1084_v55 }
 0x35a   : > { %v661_v0 = vpack.c.bf16 %v660_v63, %v660_v63 }
 0x35c   : > { %984 = vmatmul.mubr.msk.bf16.vlgmr.msra.gmra.mrb[8].mxu1 %vm649_vm2, %v661_v0 }
 0x35d   : > { %1160 = shalt.err (!%p1157_p9)
}
 0x35e   : > { %s1161_s14 = scalar_lea.hbm %s1517_s16, 64  ;;  %s1165_s3 = scalar_lea.hbm %s1598_s7, 128 }
 0x35f   : > { %p1162_p1 = scmp.ne.s32.totalorder %s1517_s16, %s1161_s14  ;;  %p1166_p3 = scmp.lt.u32.totalorder %s1517_s16, %s1598_s7 }
 0x360   : > { %p1167_p13 = scmp.lt.u32.totalorder %s1165_s3, %s1161_s14  ;;  %p1169_p6 = scmp.lt.u32.totalorder %s1161_s14, %s1517_s16 }
 0x361   : > { %p1163_p2 = pnand %p1162_p1, %p1413_p10 }
 0x362   : > { %p1168_p4 = por %p1167_p13, %p1166_p3 }
 0x363   : > { %p1164_p7 = pneg %p1163_p2 }
 0x364   : > { %p1170_p8 = por %p1169_p6, %p1168_p4 }
 0x366   : > { %p1171_p12 = pnand %p1170_p8, %p1164_p7 }
 0x368   : > { %1174 = shalt.err (!%p1171_p12)
}
 0x369   : > { %997 = dma.vmem_to_hbm [thread:$0]  (%p1413_p10), %s774_s13, 64, %s1517_s16, %s745_s21  }
 0x36a   : > { %s920_s20 = sshll.u32 %s1466_s17, 3  ;;  %s933_s10 = sshll.u32 %s1257_s27, 7 }
 0x36b   : > { %s349_s15 = scalar_lea.vmem [#allocation8], %s920_s20  ;;  %s1544_s14 = scalar_lea.hbm %s1597_s6, %s933_s10 }
 0x36c   : > { %s759_s18 = sshll.u32 %s349_s15, 4  ;;  %s740_s19 = scalar_lea.sflag [#allocation5], %s1466_s17  ;;  %s1539_s18 = int_to_ptr.vmem [resolvable:$true] %s759_s18 }
 0x36d   : > { %s1175_s13 = scalar_lea.vmem %s1539_s18, 128  ;;  %s1276_s27 = smov [#allocation8]  }
 0x36e   : > { %p1176_p11 = scmp.ne.s32.totalorder %s1539_s18, %s1175_s13  ;;  %s1179_s16 = sshll.u32 %s1276_s27, 4  ;;  %s1180_s16 = int_to_ptr.vmem [resolvable:$false] %s1179_s16 }
 0x36f   : > { %s1181_s21 = scalar_lea.vmem %s1180_s16, 256  ;;  %p1182_p9 = scmp.lt.s32.totalorder %s1539_s18, %s1180_s16 }
 0x370   : > { %p1177_p0 = pnand %p1176_p11, %p1413_p10  ;;  %p1183_p1 = scmp.lt.s32.totalorder %s1181_s21, %s1175_s13 }
 0x372   : > { %p1178_p5 = pneg %p1177_p0  ;;  %p1184_p2 = por %p1183_p1, %p1182_p9 }
 0x374   : > { %p1185_p7 = pnand %p1184_p2, %p1178_p5 }
 0x42f   : > { %v703_v1 = vpop.f32.mrb[8].mxu1 }
 0x430   : > { %709 = vst [vmem:[%s349_s15] sm:$0xff] %v703_v1  ;;  %v985_v2 = vpop.f32.mrb[9].mxu1 }
 0x431   : > { %v706_v3 = vpop.f32.mrb[10].mxu1 }
 0x432   : > { %1188 = shalt.err (!%p1185_p7)
}
 0x433   : > { %s1189_s17 = scalar_lea.hbm %s1544_s14, 128  ;;  %s1193_s9 = scalar_lea.hbm %s1597_s6, 256 }
 0x434   : > { %p1190_p3 = scmp.ne.s32.totalorder %s1544_s14, %s1189_s17  ;;  %p1194_p6 = scmp.lt.u32.totalorder %s1544_s14, %s1597_s6 }
 0x435   : > { %p1195_p8 = scmp.lt.u32.totalorder %s1193_s9, %s1189_s17  ;;  %p1197_p11 = scmp.lt.u32.totalorder %s1189_s17, %s1544_s14 }
 0x436   : > { %p1191_p13 = pnand %p1190_p3, %p1413_p10 }
 0x437   : > { %p1196_p12 = por %p1195_p8, %p1194_p6 }
 0x438   : > { %p1192_p4 = pneg %p1191_p13 }
 0x439   : > { %p1198_p0 = por %p1197_p11, %p1196_p12 }
 0x43b   : > { %p1199_p5 = pnand %p1198_p0, %p1192_p4 }
 0x43d   : > { %1202 = shalt.err (!%p1199_p5)
}
 0x43e   : > { %996 = dma.vmem_to_hbm [thread:$0]  (%p1413_p10), %s1539_s18, 128, %s1544_s14, %s740_s19   ;;  %v986_v4 = vpop.f32.mrb[11].mxu1 }
 0x43f PF: > { %s785_s10 = sand.u32 1, %s1245_s24   ;;  %p1620_p9 = scmp.ne.s32.totalorder %s1608_s12, 0 }
 0x440   : > { %p1621_p1 = scmp.ge.s32.totalorder %s1265_s29, 2  ;;  %s786_s30 = scalar_lea.sflag [#allocation5], %s785_s10 }
 0x442   : > { %p1009_p2 = pnand %p1621_p1, %p1620_p9 }
 0x444   : > { %1236 = dma.done.wait (!%p1009_p2), %s786_s30, 128  }
 0x445   : > { %1238 = vsyncadd (!%p1009_p2), %s786_s30, 4294967168  ;;  %s795_s22 = scalar_lea.sflag [#allocation10], %s785_s10 }
 0x446   : > { %1240 = dma.done.wait (!%p1009_p2), %s795_s22, 64  }
 0x447   : > { %1242 = vsyncadd (!%p1009_p2), %s795_s22, 4294967232  ;;  %s28_s29 = sadd.s32 1, %s1265_s29   ;;  %s1622_s23 = sld [smem:[#allocation15_spill]] }
 0x448   : > { %p25_p7 = scmp.ge.s32.totalorder %s28_s29, 4   ;;  %s1623_s24 = smov %s1249_s25 }
 0x449   : > { %s1624_s25 = smov %s1253_s26  ;;  %s1625_s26 = smov %s1422_s8 }
 0x44a   : > { %s1626_s27 = smov %s1261_s28  ;;  %27 = sbr.rel (!%p25_p7) target bundleno = 11 (0xb), region = 119 }
 0x44d   : > { %s1627_s28 = smov %s1622_s23 }
 0x451   :  { %800 = vsyncpa [#allocation4], 1 }
 0x452   :  { %802 = vsyncpa [#allocation4 + $0x1], 1 }
 0x453   :  { %803 = vsyncpa [#allocation7], 1 }
 0x454   :  { %804 = vsyncpa [#allocation5], 1 }
 0x455   :  { %806 = vsyncpa [#allocation5 + $0x1], 1 }
 0x456   :  { %807 = vsyncpa [#allocation10], 1 }
 0x457   :  { %809 = vsyncpa [#allocation10 + $0x1], 1 }

</bundles_post_ra>
